<compile_context>
chip_gen: v7x
topology: tpu7x:2x2x1
jax: 0.10.0
libtpu: 0.0.40
codegen_flags: <defaults>
</compile_context>

<pallas_src>
import functools

import jax
import jax.numpy as jnp
from jax.experimental import pallas as pl
from jax.experimental.pallas import tpu as pltpu


def dqn_mlp_kernel(x_ref, w1_ref, b1_ref, w2_ref, b2_ref, w3_ref, b3_ref, o_ref):
    # In-kernel f32 -> bf16 cast of the input tile (avoids a padded bf16 copy of x in HBM).
    x = x_ref[...].astype(w1_ref.dtype)
    # fc1 + ReLU   (bf16 matmul inputs, f32 accumulate, f32 bias/ReLU)
    h1 = jnp.dot(x, w1_ref[...], preferred_element_type=jnp.float32)
    h1 = jnp.maximum(h1 + b1_ref[...], 0.0)
    # fc2 + ReLU
    h2 = jnp.dot(h1.astype(w2_ref.dtype), w2_ref[...],
                 preferred_element_type=jnp.float32)
    h2 = jnp.maximum(h2 + b2_ref[...], 0.0)
    # fc3 (no activation), lane-dense (padded-N) store
    out = jnp.dot(h2.astype(w3_ref.dtype), w3_ref[...],
                  preferred_element_type=jnp.float32)
    o_ref[...] = (out + b3_ref[...]).astype(o_ref.dtype)


def _round_up(n, m):
    return (n + m - 1) // m * m


def prepare_params(params, compute_dtype=jnp.bfloat16):
    """One-time pad + cast of the raw f32 params (done OUTSIDE the per-call path).

    Weights -> compute_dtype, fc3 output dim zero-padded to a multiple of 128 lanes.
    Biases stay f32 (added on the VPU after the f32 MXU accumulate)."""
    w1, b1, w2, b2, w3, b3 = (params["w1"], params["b1"], params["w2"],
                              params["b2"], params["w3"], params["b3"])
    hid = w1.shape[1]
    out_dim = w3.shape[1]
    out_pad = _round_up(out_dim, 128)

    w3p = jnp.zeros((hid, out_pad), compute_dtype).at[:, :out_dim].set(
        w3.astype(compute_dtype))
    b3p = jnp.zeros((1, out_pad), jnp.float32).at[:, :out_dim].set(
        b3.astype(jnp.float32))
    prepared = dict(
        w1=w1.astype(compute_dtype), b1=b1.astype(jnp.float32),
        w2=w2.astype(compute_dtype), b2=b2.astype(jnp.float32),
        w3=w3p, b3=b3p)
    prepared = jax.tree_util.tree_map(jax.block_until_ready,
                                      jax.tree_util.tree_map(jnp.asarray, prepared))
    return prepared, out_dim


def pick_num_tiles(batch):
    """1 grid step on single-TC v5e/v6e (grid is a sequential loop there); 2 equal
    'parallel' tiles on dual-TC v7x when the batch is large enough to be worth it."""
    if batch < 512:
        return 1
    try:
        kind = jax.devices()[0].device_kind.lower()
    except Exception:
        return 1
    return 2 if ("v7" in kind or "7x" in kind) else 1


@functools.partial(jax.jit, static_argnames=("out_dim", "num_tiles"))
def dqn_forward(x, prepared, *, out_dim, num_tiles=1):
    """x: (B, input_dim) float32.  prepared: output of prepare_params."""
    w1, b1, w2, b2, w3, b3 = (prepared["w1"], prepared["b1"], prepared["w2"],
                              prepared["b2"], prepared["w3"], prepared["b3"])
    B, in_dim = x.shape
    hid = w1.shape[1]
    out_pad = w3.shape[1]

    # Batch tile: multiple of 16 rows (bf16 sublane packing), num_tiles grid steps.
    bm = max(_round_up(pl.cdiv(B, num_tiles), 16), 16)
    B_pad = bm * num_tiles
    xp = x if B_pad == B else jnp.pad(x, ((0, B_pad - B), (0, 0)))

    # Weights/biases are small: constant (0, 0) block every grid step -> resident in VMEM.
    full = lambda shape: pl.BlockSpec(shape, lambda i: tuple(0 for _ in shape))

    flops = 2 * B_pad * (in_dim * hid + hid * hid + hid * out_pad)
    bytes_accessed = int(xp.size) * 4 + sum(
        int(a.size) * a.dtype.itemsize for a in (w1, b1, w2, b2, w3, b3))
    bytes_accessed += B_pad * out_pad * 4  # f32 output

    out = pl.pallas_call(
        dqn_mlp_kernel,
        out_shape=jax.ShapeDtypeStruct((B_pad, out_pad), jnp.float32),
        grid_spec=pl.GridSpec(
            grid=(num_tiles,),
            in_specs=[
                pl.BlockSpec((bm, in_dim), lambda i: (i, 0)),  # x tile (f32, unpadded K)
                full((in_dim, hid)),                           # w1
                full((1, hid)),                                # b1
                full((hid, hid)),                              # w2
                full((1, hid)),                                # b2
                full((hid, out_pad)),                          # w3 (N padded to 128)
                full((1, out_pad)),                            # b3 (N padded to 128)
            ],
            out_specs=pl.BlockSpec((bm, out_pad), lambda i: (i, 0)),
        ),
        compiler_params=pltpu.CompilerParams(
            dimension_semantics=("parallel",)),
        cost_estimate=pl.CostEstimate(
            flops=int(flops), transcendentals=0,
            bytes_accessed=int(bytes_accessed)),
    )(xp, w1, b1, w2, b2, w3, b3)

    return out[:B, :out_dim]


def init_dqn_params(key, input_dim, output_dim, hidden=128):
    """Deterministic init mimicking PyTorch Linear default (uniform +/- 1/sqrt(fan_in)).
    Weights stored as (in_features, out_features)."""
    ks = jax.random.split(key, 6)

    def lin(kw, kb, fan_in, fan_out):
        bound = 1.0 / jnp.sqrt(jnp.float32(fan_in))
        w = jax.random.uniform(kw, (fan_in, fan_out), jnp.float32, -bound, bound)
        b = jax.random.uniform(kb, (1, fan_out), jnp.float32, -bound, bound)
        return w, b

    w1, b1 = lin(ks[0], ks[1], input_dim, hidden)
    w2, b2 = lin(ks[2], ks[3], hidden, hidden)
    w3, b3 = lin(ks[4], ks[5], hidden, output_dim)
    return dict(w1=w1, b1=b1, w2=w2, b2=b2, w3=w3, b3=b3)


def dqn_reference(x, p, compute_dtype=jnp.bfloat16):
    """Same numerics as the kernel: bf16 matmul inputs, f32 accumulate, f32 bias/ReLU."""
    cd = compute_dtype
    h1 = jnp.dot(x.astype(cd), p["w1"].astype(cd),
                 preferred_element_type=jnp.float32) + p["b1"]
    h1 = jnp.maximum(h1, 0.0)
    h2 = jnp.dot(h1.astype(cd), p["w2"].astype(cd),
                 preferred_element_type=jnp.float32) + p["b2"]
    h2 = jnp.maximum(h2, 0.0)
    return jnp.dot(h2.astype(cd), p["w3"].astype(cd),
                   preferred_element_type=jnp.float32) + p["b3"]


if __name__ == "__main__":
    key = jax.random.PRNGKey(0)
    k_x, k_p, k_x2 = jax.random.split(key, 3)

    # Small DQN-style shapes (e.g. CartPole-ish): state dim 16, 4 actions, batch 8.
    batch, input_dim, output_dim = 8, 16, 4
    x = jax.random.normal(k_x, (batch, input_dim), jnp.float32)
    raw_params = init_dqn_params(k_p, input_dim, output_dim)
    prepared, out_dim = prepare_params(raw_params)

    out = dqn_forward(x, prepared, out_dim=out_dim, num_tiles=pick_num_tiles(batch))
    out = jax.block_until_ready(out)
    ref = dqn_reference(x, raw_params)
    assert out.shape == (batch, output_dim)
    assert jnp.allclose(out, ref, atol=1e-2, rtol=1e-2), "mismatch vs reference (small)"

    # Also exercise a realistic replay-buffer batch (multi-tile path on v7x, 1 tile elsewhere).
    big_batch = 512
    x2 = jax.random.normal(k_x2, (big_batch, input_dim), jnp.float32)
    out2 = jax.block_until_ready(
        dqn_forward(x2, prepared, out_dim=out_dim, num_tiles=pick_num_tiles(big_batch)))
    ref2 = dqn_reference(x2, raw_params)
    assert out2.shape == (big_batch, output_dim)
    assert jnp.allclose(out2, ref2, atol=1e-2, rtol=1e-2), "mismatch vs reference (big)"

    # TODO(synk): replay buffer, epsilon-greedy action selection and the optimizer step of
    # dqn_agent.py are training-loop logic outside the nn.Module forward and are not kernels.
    print("KERNEL_OK")
</pallas_src>

<mosaic_0001>
module attributes {stable_mosaic.version = 11 : i64} {
  func.func @dqn_mlp_kernel(%arg0: i32, %arg1: memref<16x16xf32, #tpu.memory_space<vmem>>, %arg2: memref<16x128xbf16, #tpu.memory_space<vmem>>, %arg3: memref<1x128xf32, #tpu.memory_space<vmem>>, %arg4: memref<128x128xbf16, #tpu.memory_space<vmem>>, %arg5: memref<1x128xf32, #tpu.memory_space<vmem>>, %arg6: memref<128x128xbf16, #tpu.memory_space<vmem>>, %arg7: memref<1x128xf32, #tpu.memory_space<vmem>>, %arg8: memref<16x128xf32, #tpu.memory_space<vmem>>) attributes {dimension_semantics = [#tpu.dimension_semantics<parallel>], iteration_bounds = array<i64: 1>, scalar_prefetch = 0 : i64, scratch_operands = 0 : i64, tpu.core_type = #tpu.core_type<tc>, window_params = [{transform_indices = @transform_0, window_bounds = array<i64: 16, 16>}, {pipeline_mode = #tpu.pipeline_mode<synchronous>, transform_indices = @transform_1, window_bounds = array<i64: 16, 128>}, {pipeline_mode = #tpu.pipeline_mode<synchronous>, transform_indices = @transform_2, window_bounds = array<i64: 1, 128>}, {pipeline_mode = #tpu.pipeline_mode<synchronous>, transform_indices = @transform_3, window_bounds = array<i64: 128, 128>}, {pipeline_mode = #tpu.pipeline_mode<synchronous>, transform_indices = @transform_4, window_bounds = array<i64: 1, 128>}, {pipeline_mode = #tpu.pipeline_mode<synchronous>, transform_indices = @transform_5, window_bounds = array<i64: 128, 128>}, {pipeline_mode = #tpu.pipeline_mode<synchronous>, transform_indices = @transform_6, window_bounds = array<i64: 1, 128>}, {transform_indices = @transform_7, window_bounds = array<i64: 16, 128>}]} {
    %c0 = arith.constant 0 : index
    %c0_0 = arith.constant 0 : index
    %0 = vector.load %arg1[%c0, %c0_0] : memref<16x16xf32, #tpu.memory_space<vmem>>, vector<16x16xf32>
    %1 = arith.truncf %0 : vector<16x16xf32> to vector<16x16xbf16>
    %c0_1 = arith.constant 0 : index
    %c0_2 = arith.constant 0 : index
    %2 = vector.load %arg2[%c0_1, %c0_2] : memref<16x128xbf16, #tpu.memory_space<vmem>>, vector<16x128xbf16>
    %cst = arith.constant dense<0.000000e+00> : vector<16x128xf32>
    %3 = tpu.matmul %1, %2, %cst {dimension_numbers = #tpu.dot_dimension_numbers<[1], [0], [0], [1], [0, 0, 1, 1], [], []>} : vector<16x16xbf16>, vector<16x128xbf16>, vector<16x128xf32> -> vector<16x128xf32>
    %c0_3 = arith.constant 0 : index
    %c0_4 = arith.constant 0 : index
    %4 = vector.load %arg3[%c0_3, %c0_4] : memref<1x128xf32, #tpu.memory_space<vmem>>, vector<1x128xf32>
    %5 = vector.broadcast %4 : vector<1x128xf32> to vector<16x128xf32>
    %6 = arith.addf %3, %5 : vector<16x128xf32>
    %cst_5 = arith.constant 0.000000e+00 : f32
    %7 = vector.broadcast %cst_5 : f32 to vector<16x128xf32>
    %8 = arith.maximumf %6, %7 : vector<16x128xf32>
    %9 = arith.truncf %8 : vector<16x128xf32> to vector<16x128xbf16>
    %c0_6 = arith.constant 0 : index
    %c0_7 = arith.constant 0 : index
    %10 = vector.load %arg4[%c0_6, %c0_7] : memref<128x128xbf16, #tpu.memory_space<vmem>>, vector<128x128xbf16>
    %cst_8 = arith.constant dense<0.000000e+00> : vector<16x128xf32>
    %11 = tpu.matmul %9, %10, %cst_8 {dimension_numbers = #tpu.dot_dimension_numbers<[1], [0], [0], [1], [0, 0, 1, 1], [], []>} : vector<16x128xbf16>, vector<128x128xbf16>, vector<16x128xf32> -> vector<16x128xf32>
    %c0_9 = arith.constant 0 : index
    %c0_10 = arith.constant 0 : index
    %12 = vector.load %arg5[%c0_9, %c0_10] : memref<1x128xf32, #tpu.memory_space<vmem>>, vector<1x128xf32>
    %13 = vector.broadcast %12 : vector<1x128xf32> to vector<16x128xf32>
    %14 = arith.addf %11, %13 : vector<16x128xf32>
    %cst_11 = arith.constant 0.000000e+00 : f32
    %15 = vector.broadcast %cst_11 : f32 to vector<16x128xf32>
    %16 = arith.maximumf %14, %15 : vector<16x128xf32>
    %17 = arith.truncf %16 : vector<16x128xf32> to vector<16x128xbf16>
    %c0_12 = arith.constant 0 : index
    %c0_13 = arith.constant 0 : index
    %18 = vector.load %arg6[%c0_12, %c0_13] : memref<128x128xbf16, #tpu.memory_space<vmem>>, vector<128x128xbf16>
    %cst_14 = arith.constant dense<0.000000e+00> : vector<16x128xf32>
    %19 = tpu.matmul %17, %18, %cst_14 {dimension_numbers = #tpu.dot_dimension_numbers<[1], [0], [0], [1], [0, 0, 1, 1], [], []>} : vector<16x128xbf16>, vector<128x128xbf16>, vector<16x128xf32> -> vector<16x128xf32>
    %c0_15 = arith.constant 0 : index
    %c0_16 = arith.constant 0 : index
    %20 = vector.load %arg7[%c0_15, %c0_16] : memref<1x128xf32, #tpu.memory_space<vmem>>, vector<1x128xf32>
    %21 = vector.broadcast %20 : vector<1x128xf32> to vector<16x128xf32>
    %22 = arith.addf %19, %21 : vector<16x128xf32>
    %c0_17 = arith.constant 0 : index
    %c0_18 = arith.constant 0 : index
    %23 = vector.load %arg8[%c0_17, %c0_18] : memref<16x128xf32, #tpu.memory_space<vmem>>, vector<16x128xf32>
    tpu.vector_store %arg8[%c0_17, %c0_18], %22 {strides = array<i32>} : memref<16x128xf32, #tpu.memory_space<vmem>>, vector<16x128xf32>,
    return
  }
  func.func @transform_0(%arg0: i32) -> (i32, i32) {
    %c0_i32 = arith.constant 0 : i32
    %c0_i32_0 = arith.constant 0 : i32
    return %arg0, %c0_i32 : i32, i32
  }
  func.func @transform_1(%arg0: i32) -> (i32, i32) {
    %c0_i32 = arith.constant 0 : i32
    %c0_i32_0 = arith.constant 0 : i32
    %c0_i32_1 = arith.constant 0 : i32
    return %c0_i32, %c0_i32_0 : i32, i32
  }
  func.func @transform_2(%arg0: i32) -> (i32, i32) {
    %c0_i32 = arith.constant 0 : i32
    %c0_i32_0 = arith.constant 0 : i32
    %c0_i32_1 = arith.constant 0 : i32
    return %c0_i32, %c0_i32_0 : i32, i32
  }
  func.func @transform_3(%arg0: i32) -> (i32, i32) {
    %c0_i32 = arith.constant 0 : i32
    %c0_i32_0 = arith.constant 0 : i32
    %c0_i32_1 = arith.constant 0 : i32
    return %c0_i32, %c0_i32_0 : i32, i32
  }
  func.func @transform_4(%arg0: i32) -> (i32, i32) {
    %c0_i32 = arith.constant 0 : i32
    %c0_i32_0 = arith.constant 0 : i32
    %c0_i32_1 = arith.constant 0 : i32
    return %c0_i32, %c0_i32_0 : i32, i32
  }
  func.func @transform_5(%arg0: i32) -> (i32, i32) {
    %c0_i32 = arith.constant 0 : i32
    %c0_i32_0 = arith.constant 0 : i32
    %c0_i32_1 = arith.constant 0 : i32
    return %c0_i32, %c0_i32_0 : i32, i32
  }
  func.func @transform_6(%arg0: i32) -> (i32, i32) {
    %c0_i32 = arith.constant 0 : i32
    %c0_i32_0 = arith.constant 0 : i32
    %c0_i32_1 = arith.constant 0 : i32
    return %c0_i32, %c0_i32_0 : i32, i32
  }
  func.func @transform_7(%arg0: i32) -> (i32, i32) {
    %c0_i32 = arith.constant 0 : i32
    %c0_i32_0 = arith.constant 0 : i32
    return %arg0, %c0_i32 : i32, i32
  }
}

</mosaic_0001>

<bundles_post_ra>
// kernel: dqn_forward.1
= control target key start
LH: loop header
LB: loop body
LE: loop exit
PB: predicated region body
PF: predicated region fallthrough
CT: control target
= control target key end

     0   :  { %12 = vsyncpa [#allocation3], 0  ;;  %s631_s0 = inlined_call_operand.vmem [shape: f32[16,16], index: 0, kind: input, shape index: {}]   ;;  %s632_s1 = inlined_call_operand.vmem [shape: bf16[16,128], index: 1, kind: input, shape index: {}]   ;;  %s633_s2 = inlined_call_operand.vmem [shape: f32[1,128], index: 2, kind: input, shape index: {}]   ;;  %s634_s3 = inlined_call_operand.hbm [shape: bf16[128,128], index: 3, kind: input, shape index: {}]   ;;  %s635_s4 = inlined_call_operand.vmem [shape: f32[1,128], index: 4, kind: input, shape index: {}]   ;;  %s636_s5 = inlined_call_operand.hbm [shape: bf16[128,128], index: 5, kind: input, shape index: {}]   ;;  %s637_s6 = inlined_call_operand.vmem [shape: f32[1,128], index: 6, kind: input, shape index: {}]   ;;  %s638_s7 = inlined_call_operand.vmem [shape: f32[16,128], index: 7, kind: output, shape index: {}]  }
   0x1   :  { %13 = vsyncpa [#allocation5], 0  ;;  %s514_s24 = smov [#allocation2]   ;;  %s466_s28 = scalar_lea.hbm %s634_s3, 1024 }
   0x2   :  { %s25_s25 = sshll.u32 %s514_s24, 4  ;;  %p467_p0 = scmp.ne.s32.totalorder %s634_s3, %s466_s28  ;;  %s26_s25 = int_to_ptr.vmem [resolvable:$true] %s25_s25 }
   0x3   :  { %p470_p1 = scmp.lt.u32.totalorder %s466_s28, %s634_s3 }
   0x5   :  { %p472_p2 = pnand %p470_p1, %p467_p0 }
   0x7   :  { %475 = shalt.err (!%p472_p2)
}
   0x8   :  { %s476_s10 = scalar_lea.vmem %s26_s25, 1024  ;;  %p481_p4 = scmp.lt.s32.totalorder %s26_s25, %s26_s25 }
   0x9   :  { %p477_p3 = scmp.ne.s32.totalorder %s26_s25, %s476_s10  ;;  %p482_p5 = scmp.lt.s32.totalorder %s476_s10, %s476_s10 }
   0xb   :  { %p483_p6 = por %p482_p5, %p481_p4 }
   0xd   :  { %p484_p7 = pnand %p483_p6, %p477_p3 }
   0xf   :  { %487 = shalt.err (!%p484_p7)
}
  0x10   :  { %s515_s11 = smov 64   ;;  %s516_s12 = smov 4  }
  0x11   :  { %31 = dma.hbm_to_vmem [thread:$0]  %s634_s3, 1024, %s26_s25, [#allocation3], %s515_s11, %s515_s11, %s516_s12  }
  0x12   :  { %s517_s15 = smov [#allocation4]   ;;  %s488_s19 = scalar_lea.hbm %s636_s5, 1024 }
  0x13   :  { %s39_s16 = sshll.u32 %s517_s15, 4  ;;  %p489_p8 = scmp.ne.s32.totalorder %s636_s5, %s488_s19  ;;  %s40_s16 = int_to_ptr.vmem [resolvable:$true] %s39_s16 }
  0x14   :  { %p492_p9 = scmp.lt.u32.totalorder %s488_s19, %s636_s5 }
  0x16   :  { %p494_p10 = pnand %p492_p9, %p489_p8 }
  0x18   :  { %497 = shalt.err (!%p494_p10)
}
  0x19   :  { %s498_s24 = scalar_lea.vmem %s40_s16, 1024  ;;  %p503_p12 = scmp.lt.s32.totalorder %s40_s16, %s40_s16 }
  0x1a   :  { %p499_p11 = scmp.ne.s32.totalorder %s40_s16, %s498_s24  ;;  %p504_p13 = scmp.lt.s32.totalorder %s498_s24, %s498_s24 }
  0x1c   :  { %p505_p0 = por %p504_p13, %p503_p12 }
  0x1e   :  { %p506_p1 = pnand %p505_p0, %p499_p11 }
  0x20   :  { %509 = shalt.err (!%p506_p1)
}
  0x21   :  { %45 = dma.hbm_to_vmem [thread:$0]  %s636_s5, 1024, %s40_s16, [#allocation5], %s515_s11, %s515_s11, %s516_s12  }
  0x22   :  { %510 = dma.done.wait [#allocation3], 1024  }
  0x23   :  { %511 = vsyncadd [#allocation3], 4294966272 }
  0x24   :  { %512 = dma.done.wait [#allocation5], 1024  }
  0x25   :  { %513 = vsyncadd [#allocation5], 4294966272  ;;  %v518_v0 = vmov 0.0   ;;  %vm519_vm0 = vmmov 0   ;;  %v449_v1 = vld [vmem:[%s632_s1] sm:$0xff]   ;;  %v56_v3 = vld [vmem:[%s631_s0 + $0x8] sm:$0xff] }
  0x26   :  { %397 = vmatprep.subr.bf16.mxu0 %v518_v0  ;;  %399 = vmatprep.mubr.msk.bf16.mxu0 %vm519_vm0, %v518_v0  ;;  %v55_v2 = vld [vmem:[%s631_s0] sm:$0xff]  ;;  %vm73_vm1 = vcmask 130048   ;;  %v451_v6 = vld [vmem:[#allocation2 + $0x8] sm:$0xff]   ;;  %v452_v7 = vld [vmem:[#allocation2 + $0x10] sm:$0xff]  }
  0x27   :  { %403 = vmatprep.subr.bf16.mxu1 %v518_v0  ;;  %419 = vmatprep.mubr.msk.bf16.mxu1 %vm519_vm0, %v518_v0  ;;  %v57_v4 = vpack.c.bf16 %v56_v3, %v55_v2  ;;  %v450_v5 = vld [vmem:[#allocation2] sm:$0xff]   ;;  %v453_v8 = vld [vmem:[#allocation2 + $0x18] sm:$0xff]   ;;  %v455_v10 = vld [vmem:[#allocation2 + $0x28] sm:$0xff]  }
  0x28   :  { %398 = vmatpush3.bf16.msra.mxu0 %v449_v1  ;;  %404 = vmatpush3.bf16.msra.mxu1 %v450_v5  ;;  %v454_v9 = vld [vmem:[#allocation2 + $0x20] sm:$0xff]   ;;  %v456_v11 = vld [vmem:[#allocation2 + $0x30] sm:$0xff]   ;;  %v457_v12 = vld [vmem:[#allocation2 + $0x38] sm:$0xff]  }
  0x29   :  { %423 = vmatprep.subr.bf16.mxu0 %v518_v0  ;;  %405 = vmatprep.subr.bf16.mxu1 %v518_v0  ;;  %v458_v13 = vld [vmem:[#allocation4] sm:$0xff]   ;;  %v459_v14 = vld [vmem:[#allocation4 + $0x8] sm:$0xff]   ;;  %v460_v15 = vld [vmem:[#allocation4 + $0x10] sm:$0xff]  }
  0x2a   :  { %v461_v16 = vld [vmem:[#allocation4 + $0x18] sm:$0xff]   ;;  %v462_v17 = vld [vmem:[#allocation4 + $0x20] sm:$0xff]   ;;  %v463_v18 = vld [vmem:[#allocation4 + $0x28] sm:$0xff]  }
  0x2b   :  { %400 = vmatmul.mubr.msk.bf16.vlgmr.msra.gmra.mrb[0].mxu0 %vm73_vm1, %v57_v4  ;;  %v356_v19 = vld [vmem:[%s633_s2] ss:$0 sm:$0xff]  ;;  %v464_v29 = vld [vmem:[#allocation4 + $0x30] sm:$0xff]   ;;  %v465_v30 = vld [vmem:[#allocation4 + $0x38] sm:$0xff]  }
  0x2c   :  { %439 = vmatprep.mubr.msk.bf16.mxu0 %vm519_vm0, %v518_v0  ;;  %406 = vmatpush3.bf16.msra.mxu1 %v451_v6  ;;  %v359_v31 = vld [vmem:[%s635_s4] ss:$0 sm:$0xff] }
  0x2d   :  { %407 = vmatprep.subr.bf16.mxu1 %v518_v0  ;;  %424 = vmatpush3.bf16.msra.mxu0 %v458_v13  ;;  %v368_v41 = vld [vmem:[%s637_s6] ss:$0 sm:$0xff] }
  0x2e   :  { %425 = vmatprep.subr.bf16.mxu0 %v518_v0 }
  0x30   :  { %408 = vmatpush3.bf16.msra.mxu1 %v452_v7 }
  0x31   :  { %409 = vmatprep.subr.bf16.mxu1 %v518_v0  ;;  %426 = vmatpush3.bf16.msra.mxu0 %v459_v14 }
  0x32   :  { %427 = vmatprep.subr.bf16.mxu0 %v518_v0 }
  0x34   :  { %410 = vmatpush3.bf16.msra.mxu1 %v453_v8 }
  0x35   :  { %411 = vmatprep.subr.bf16.mxu1 %v518_v0  ;;  %428 = vmatpush3.bf16.msra.mxu0 %v460_v15 }
  0x36   :  { %429 = vmatprep.subr.bf16.mxu0 %v518_v0 }
  0x38   :  { %412 = vmatpush3.bf16.msra.mxu1 %v454_v9 }
  0x39   :  { %413 = vmatprep.subr.bf16.mxu1 %v518_v0  ;;  %430 = vmatpush3.bf16.msra.mxu0 %v461_v16 }
  0x3a   :  { %431 = vmatprep.subr.bf16.mxu0 %v518_v0 }
  0x3c   :  { %414 = vmatpush3.bf16.msra.mxu1 %v455_v10 }
  0x3d   :  { %415 = vmatprep.subr.bf16.mxu1 %v518_v0  ;;  %432 = vmatpush3.bf16.msra.mxu0 %v462_v17 }
  0x3e   :  { %433 = vmatprep.subr.bf16.mxu0 %v518_v0 }
  0x40   :  { %416 = vmatpush3.bf16.msra.mxu1 %v456_v11 }
  0x41   :  { %417 = vmatprep.subr.bf16.mxu1 %v518_v0  ;;  %434 = vmatpush3.bf16.msra.mxu0 %v463_v18 }
  0x42   :  { %435 = vmatprep.subr.bf16.mxu0 %v518_v0 }
  0x44   :  { %418 = vmatpush3.bf16.msra.mxu1 %v457_v12 }
  0x45   :  { %436 = vmatpush3.bf16.msra.mxu0 %v464_v29 }
  0x46   :  { %437 = vmatprep.subr.bf16.mxu0 %v518_v0 }
  0x49   :  { %438 = vmatpush3.bf16.msra.mxu0 %v465_v30 }
  0xfe   :  { %v111_v20 = vpop.f32.mrb[0].mxu0 }
  0xff   :  { %v112_v21 = vadd.f32 %v356_v19, %v111_v20  ;;  %v401_v22 = vpop.f32.mrb[1].mxu0 }
 0x100   :  { %v114_v23 = vpop.f32.mrb[2].mxu0 }
 0x101   :  { %v115_v24 = vadd.f32 %v356_v19, %v114_v23  ;;  %v402_v25 = vpop.f32.mrb[3].mxu0  ;;  %v118_v26 = vmax.f32 %v112_v21, 0.0 }
 0x103   :  { %v119_v27 = vmax.f32 %v115_v24, 0.0 }
 0x105   :  { %v120_v28 = vpack.c.bf16 %v119_v27, %v118_v26 }
 0x107   :  { %420 = vmatmul.mubr.bf16.vlgmr.msra.gmra.mrb[0].mxu1 %v120_v28 }
 0x1da   :  { %v226_v32 = vpop.f32.mrb[0].mxu1 }
 0x1db   :  { %v227_v33 = vadd.f32 %v359_v31, %v226_v32  ;;  %v421_v34 = vpop.f32.mrb[1].mxu1 }
 0x1dc   :  { %v229_v35 = vpop.f32.mrb[2].mxu1 }
 0x1dd   :  { %v230_v36 = vadd.f32 %v359_v31, %v229_v35  ;;  %v422_v37 = vpop.f32.mrb[3].mxu1  ;;  %v233_v38 = vmax.f32 %v227_v33, 0.0 }
 0x1df   :  { %v234_v39 = vmax.f32 %v230_v36, 0.0 }
 0x1e1   :  { %v235_v40 = vpack.c.bf16 %v234_v39, %v233_v38 }
 0x1e3   :  { %440 = vmatmul.mubr.bf16.vlgmr.msra.gmra.mrb[4].mxu0 %v235_v40 }
 0x2b6   :  { %v341_v42 = vpop.f32.mrb[4].mxu0 }
 0x2b7   :  { %v342_v43 = vadd.f32 %v368_v41, %v341_v42  ;;  %v441_v44 = vpop.f32.mrb[5].mxu0 }
 0x2b8   :  { %v344_v45 = vpop.f32.mrb[6].mxu0 }
 0x2b9   :  { %348 = vst [vmem:[%s638_s7] sm:$0xff] %v342_v43  ;;  %v345_v46 = vadd.f32 %v368_v41, %v344_v45  ;;  %v442_v47 = vpop.f32.mrb[7].mxu0 }
 0x2bb   :  { %349 = vst [vmem:[%s638_s7 + $0x8] sm:$0xff] %v345_v46 }
 0x2bc   :  { %354 = vsyncpa [#allocation3], 1 }
 0x2bd   :  { %355 = vsyncpa [#allocation5], 1 }

</bundles_post_ra>
